<compile_context>
chip_gen: v5e
topology: v5e:2x2
jax: 0.10.0
libtpu: 0.0.40
codegen_flags: <defaults>
</compile_context>

<pallas_src>
import math

import jax
import jax.numpy as jnp
from jax.experimental import pallas as pl
from jax.experimental.pallas import tpu as pltpu

HIDDEN = 128
NUM_EXPERTS = 6
TOP_K = 2
BATCH = 4
SEQ = 10

GATE_OFF = NUM_EXPERTS * HIDDEN       # lane offset of the gate block (768)
FUSED_N = GATE_OFF + HIDDEN           # fused lane width (896)


def moe_kernel(x_ref, w_ref, b_ref, o_ref):
    T = x_ref.shape[0]
    H = HIDDEN
    E = NUM_EXPERTS

    x = x_ref[...]                                                      # (T, H) f32

    # ---- ONE fused MXU issue: 6 experts (E*H lanes) + gate (H lanes, zero-
    #      padded beyond column E).  f32 in / f32 accumulation, biases folded. ----
    y_all = jnp.dot(x, w_ref[...],
                    preferred_element_type=jnp.float32) + b_ref[...]    # (T, E*H+H)

    # ---- Gate: lane-aligned 128-wide slice; mask padded columns with -inf ----
    gate_blk = y_all[:, GATE_OFF:]                                      # (T, H)
    col = jax.lax.broadcasted_iota(jnp.int32, (T, H), 1)                # (T, H)
    logits = jnp.where(col < E, gate_blk, -jnp.inf)
    m = jnp.max(logits, axis=-1, keepdims=True)
    e = jnp.exp(logits - m)                                             # padded -> 0
    denom = jnp.sum(e, axis=-1, keepdims=True)
    probs = e * pl.reciprocal(denom, approx=False)                      # (T, H)

    # ---- Top-2 selection (ties -> lowest expert index, like torch.topk).
    #      Padded columns are exactly 0 < any real softmax prob, so they are
    #      never selected; comparisons are on the exact probs tensor. ----
    val1 = jnp.max(probs, axis=-1, keepdims=True)                       # (T, 1)
    idx1 = jnp.min(jnp.where(probs == val1, col, H), axis=-1, keepdims=True)
    probs_m = jnp.where(col == idx1, -jnp.inf, probs)
    val2 = jnp.max(probs_m, axis=-1, keepdims=True)                     # (T, 1)
    idx2 = jnp.min(jnp.where(probs_m == val2, col, H), axis=-1, keepdims=True)

    # ---- Dense combine weights: one vreg-wide select pass ----
    w_dense = (val1 * (col == idx1).astype(jnp.float32)
               + val2 * (col == idx2).astype(jnp.float32))              # (T, H)

    # ---- Weighted combine over lane-aligned 128-wide expert slices ----
    acc = w_dense[:, 0:1] * y_all[:, 0:H]
    for ei in range(1, E):  # static unroll (small expert count)
        acc = acc + w_dense[:, ei:ei + 1] * y_all[:, ei * H:(ei + 1) * H]
    o_ref[...] = acc


def make_fused_params(wg, bg, we, be):
    """One-time parameter fusion (hoisted out of the per-call path).

    Returns:
      w_fused: (H, E*H + H) f32 -- [expert_0 | ... | expert_{E-1} | gate(pad)]
      b_fused: (1, E*H + H) f32 -- matching concatenated biases.
    """
    H, E = HIDDEN, NUM_EXPERTS
    we_all = jnp.transpose(we, (1, 0, 2)).reshape(H, E * H)             # (H, E*H)
    wg_pad = jnp.pad(wg, ((0, 0), (0, H - E)))                          # (H, H)
    w_fused = jnp.concatenate([we_all, wg_pad], axis=1)                 # (H, E*H+H)

    be_all = be.reshape(1, E * H)
    bg_pad = jnp.pad(bg.reshape(1, E), ((0, 0), (0, H - E)))            # (1, H)
    b_fused = jnp.concatenate([be_all, bg_pad], axis=1)                 # (1, E*H+H)
    return w_fused, b_fused


@jax.jit
def moe_forward(x, w_fused, b_fused):
    B, S, H = x.shape
    T = B * S
    xf = x.reshape(T, H)

    out = pl.pallas_call(
        moe_kernel,
        out_shape=jax.ShapeDtypeStruct((T, H), jnp.float32),
        grid_spec=pltpu.PrefetchScalarGridSpec(
            num_scalar_prefetch=0,
            grid=(1,),  # single step: whole problem in one block, one MXU issue
            in_specs=[
                pl.BlockSpec((T, H), lambda i: (0, 0)),           # x (all tokens)
                pl.BlockSpec((H, FUSED_N), lambda i: (0, 0)),     # fused W (experts+gate)
                pl.BlockSpec((1, FUSED_N), lambda i: (0, 0)),     # fused bias
            ],
            out_specs=pl.BlockSpec((T, H), lambda i: (0, 0)),
        ),
        compiler_params=pltpu.CompilerParams(
            dimension_semantics=("arbitrary",)),
    )(xf, w_fused, b_fused)
    return out.reshape(B, S, H)


def moe_ref(x, wg, bg, we, be):
    """Pure-JAX f32 reference mirroring the PyTorch forward."""
    gates = jax.nn.softmax(jnp.einsum("bsh,he->bse", x, wg) + bg[0], axis=-1)
    vals, idxs = jax.lax.top_k(gates, TOP_K)
    y_all = jnp.einsum("bsh,ehd->bsed", x, we) + be[None, None]          # (B,S,E,H)
    out = jnp.zeros_like(x)
    for i in range(TOP_K):
        sel = jnp.take_along_axis(
            y_all, idxs[..., i][..., None, None], axis=2)[..., 0, :]
        out = out + vals[..., i][..., None] * sel
    return out


if __name__ == "__main__":
    key = jax.random.PRNGKey(0)
    kx, kwg, kbg, kwe, kbe = jax.random.split(key, 5)
    bound = 1.0 / math.sqrt(HIDDEN)

    # Deterministic parameter init (torch.nn.Linear-style uniform range)
    wg = jax.random.uniform(kwg, (HIDDEN, NUM_EXPERTS), jnp.float32, -bound, bound)
    bg = jax.random.uniform(kbg, (1, NUM_EXPERTS), jnp.float32, -bound, bound)
    we = jax.random.uniform(kwe, (NUM_EXPERTS, HIDDEN, HIDDEN), jnp.float32, -bound, bound)
    be = jax.random.uniform(kbe, (NUM_EXPERTS, HIDDEN), jnp.float32, -bound, bound)

    x = jax.random.normal(kx, (BATCH, SEQ, HIDDEN), jnp.float32)

    # One-time (init-path) parameter fusion -- not repeated per forward call.
    w_fused, b_fused = jax.block_until_ready(make_fused_params(wg, bg, we, be))

    out = moe_forward(x, w_fused, b_fused)
    out = jax.block_until_ready(out)

    ref = moe_ref(x, wg, bg, we, be)
    assert out.shape == (BATCH, SEQ, HIDDEN)
    # f32 operands throughout; tolerance kept conservative to cover the TPU
    # default-precision MXU matmul vs the XLA einsum reference (observed error
    # is ~1e-3 or better at H=128).
    assert jnp.allclose(out, ref, atol=2e-2, rtol=2e-2), (
        f"max abs err {jnp.max(jnp.abs(out - ref))}")

    print("KERNEL_OK")
</pallas_src>

<mosaic_0001>
module attributes {stable_mosaic.version = 11 : i64} {
  func.func @moe_kernel(%arg0: i32, %arg1: memref<40x128xf32, #tpu.memory_space<vmem>>, %arg2: memref<128x896xf32, #tpu.memory_space<vmem>>, %arg3: memref<1x896xf32, #tpu.memory_space<vmem>>, %arg4: memref<40x128xf32, #tpu.memory_space<vmem>>) attributes {dimension_semantics = [#tpu.dimension_semantics<arbitrary>], iteration_bounds = array<i64: 1>, scalar_prefetch = 0 : i64, scratch_operands = 0 : i64, tpu.core_type = #tpu.core_type<tc>, window_params = [{pipeline_mode = #tpu.pipeline_mode<synchronous>, transform_indices = @transform_0, window_bounds = array<i64: 40, 128>}, {pipeline_mode = #tpu.pipeline_mode<synchronous>, transform_indices = @transform_1, window_bounds = array<i64: 128, 896>}, {pipeline_mode = #tpu.pipeline_mode<synchronous>, transform_indices = @transform_2, window_bounds = array<i64: 1, 896>}, {pipeline_mode = #tpu.pipeline_mode<synchronous>, transform_indices = @transform_3, window_bounds = array<i64: 40, 128>}]} {
    %c0 = arith.constant 0 : index
    %c0_0 = arith.constant 0 : index
    %0 = vector.load %arg1[%c0, %c0_0] : memref<40x128xf32, #tpu.memory_space<vmem>>, vector<40x128xf32>
    %c0_1 = arith.constant 0 : index
    %c0_2 = arith.constant 0 : index
    %1 = vector.load %arg2[%c0_1, %c0_2] : memref<128x896xf32, #tpu.memory_space<vmem>>, vector<128x896xf32>
    %cst = arith.constant dense<0.000000e+00> : vector<40x896xf32>
    %2 = tpu.matmul %0, %1, %cst {dimension_numbers = #tpu.dot_dimension_numbers<[1], [0], [0], [1], [0, 0, 1, 1], [], []>} : vector<40x128xf32>, vector<128x896xf32>, vector<40x896xf32> -> vector<40x896xf32>
    %c0_3 = arith.constant 0 : index
    %c0_4 = arith.constant 0 : index
    %3 = vector.load %arg3[%c0_3, %c0_4] : memref<1x896xf32, #tpu.memory_space<vmem>>, vector<1x896xf32>
    %4 = vector.broadcast %3 : vector<1x896xf32> to vector<40x896xf32>
    %5 = arith.addf %2, %4 : vector<40x896xf32>
    %6 = vector.extract_strided_slice %5 {offsets = [0, 768], sizes = [40, 128], strides = [1, 1]} : vector<40x896xf32> to vector<40x128xf32>
    %7 = tpu.iota {dimensions = array<i32: 1>} : vector<40x128xi32>
    %c6_i32 = arith.constant 6 : i32
    %8 = vector.broadcast %c6_i32 : i32 to vector<40x128xi32>
    %9 = arith.cmpi slt, %7, %8 : vector<40x128xi32>
    %cst_5 = arith.constant 0xFF800000 : f32
    %10 = vector.broadcast %cst_5 : f32 to vector<40x128xf32>
    %11 = arith.select %9, %6, %10 : vector<40x128xi1>, vector<40x128xf32>
    %cst_6 = arith.constant dense<0xFF800000> : vector<40xf32>
    %12 = vector.multi_reduction <maximumf>, %11, %cst_6 [1] : vector<40x128xf32> to vector<40xf32>
    %13 = vector.shape_cast %12 : vector<40xf32> to vector<40x1xf32>
    %14 = vector.broadcast %13 : vector<40x1xf32> to vector<40x128xf32>
    %15 = arith.subf %11, %14 : vector<40x128xf32>
    %16 = math.exp %15 : vector<40x128xf32>
    %cst_7 = arith.constant dense<0.000000e+00> : vector<40xf32>
    %17 = vector.multi_reduction <add>, %16, %cst_7 [1] : vector<40x128xf32> to vector<40xf32>
    %18 = vector.shape_cast %17 : vector<40xf32> to vector<40x1xf32>
    %19 = tpu.reciprocal %18 : vector<40x1xf32> -> vector<40x1xf32>
    %20 = vector.broadcast %19 : vector<40x1xf32> to vector<40x128xf32>
    %21 = arith.mulf %16, %20 : vector<40x128xf32>
    %cst_8 = arith.constant dense<0xFF800000> : vector<40xf32>
    %22 = vector.multi_reduction <maximumf>, %21, %cst_8 [1] : vector<40x128xf32> to vector<40xf32>
    %23 = vector.shape_cast %22 : vector<40xf32> to vector<40x1xf32>
    %24 = vector.broadcast %23 : vector<40x1xf32> to vector<40x128xf32>
    %25 = arith.cmpf oeq, %21, %24 : vector<40x128xf32>
    %c128_i32 = arith.constant 128 : i32
    %26 = vector.broadcast %c128_i32 : i32 to vector<40x128xi32>
    %27 = arith.select %25, %7, %26 : vector<40x128xi1>, vector<40x128xi32>
    %cst_9 = arith.constant dense<2147483647> : vector<40xi32>
    %28 = vector.multi_reduction <minsi>, %27, %cst_9 [1] : vector<40x128xi32> to vector<40xi32>
    %29 = vector.shape_cast %28 : vector<40xi32> to vector<40x1xi32>
    %30 = vector.broadcast %29 : vector<40x1xi32> to vector<40x128xi32>
    %31 = arith.cmpi eq, %7, %30 : vector<40x128xi32>
    %cst_10 = arith.constant 0xFF800000 : f32
    %32 = vector.broadcast %cst_10 : f32 to vector<40x128xf32>
    %33 = arith.select %31, %32, %21 : vector<40x128xi1>, vector<40x128xf32>
    %cst_11 = arith.constant dense<0xFF800000> : vector<40xf32>
    %34 = vector.multi_reduction <maximumf>, %33, %cst_11 [1] : vector<40x128xf32> to vector<40xf32>
    %35 = vector.shape_cast %34 : vector<40xf32> to vector<40x1xf32>
    %36 = vector.broadcast %35 : vector<40x1xf32> to vector<40x128xf32>
    %37 = arith.cmpf oeq, %33, %36 : vector<40x128xf32>
    %c128_i32_12 = arith.constant 128 : i32
    %38 = vector.broadcast %c128_i32_12 : i32 to vector<40x128xi32>
    %39 = arith.select %37, %7, %38 : vector<40x128xi1>, vector<40x128xi32>
    %cst_13 = arith.constant dense<2147483647> : vector<40xi32>
    %40 = vector.multi_reduction <minsi>, %39, %cst_13 [1] : vector<40x128xi32> to vector<40xi32>
    %41 = vector.shape_cast %40 : vector<40xi32> to vector<40x1xi32>
    %42 = vector.broadcast %29 : vector<40x1xi32> to vector<40x128xi32>
    %43 = arith.cmpi eq, %7, %42 : vector<40x128xi32>
    %44 = arith.extui %43 : vector<40x128xi1> to vector<40x128xi32>
    %45 = arith.sitofp %44 : vector<40x128xi32> to vector<40x128xf32>
    %46 = vector.broadcast %23 : vector<40x1xf32> to vector<40x128xf32>
    %47 = arith.mulf %46, %45 : vector<40x128xf32>
    %48 = vector.broadcast %41 : vector<40x1xi32> to vector<40x128xi32>
    %49 = arith.cmpi eq, %7, %48 : vector<40x128xi32>
    %50 = arith.extui %49 : vector<40x128xi1> to vector<40x128xi32>
    %51 = arith.sitofp %50 : vector<40x128xi32> to vector<40x128xf32>
    %52 = vector.broadcast %35 : vector<40x1xf32> to vector<40x128xf32>
    %53 = arith.mulf %52, %51 : vector<40x128xf32>
    %54 = arith.addf %47, %53 : vector<40x128xf32>
    %55 = vector.extract_strided_slice %54 {offsets = [0, 0], sizes = [40, 1], strides = [1, 1]} : vector<40x128xf32> to vector<40x1xf32>
    %56 = vector.extract_strided_slice %5 {offsets = [0, 0], sizes = [40, 128], strides = [1, 1]} : vector<40x896xf32> to vector<40x128xf32>
    %57 = vector.broadcast %55 : vector<40x1xf32> to vector<40x128xf32>
    %58 = arith.mulf %57, %56 : vector<40x128xf32>
    %59 = vector.extract_strided_slice %54 {offsets = [0, 1], sizes = [40, 1], strides = [1, 1]} : vector<40x128xf32> to vector<40x1xf32>
    %60 = vector.extract_strided_slice %5 {offsets = [0, 128], sizes = [40, 128], strides = [1, 1]} : vector<40x896xf32> to vector<40x128xf32>
    %61 = vector.broadcast %59 : vector<40x1xf32> to vector<40x128xf32>
    %62 = arith.mulf %61, %60 : vector<40x128xf32>
    %63 = arith.addf %58, %62 : vector<40x128xf32>
    %64 = vector.extract_strided_slice %54 {offsets = [0, 2], sizes = [40, 1], strides = [1, 1]} : vector<40x128xf32> to vector<40x1xf32>
    %65 = vector.extract_strided_slice %5 {offsets = [0, 256], sizes = [40, 128], strides = [1, 1]} : vector<40x896xf32> to vector<40x128xf32>
    %66 = vector.broadcast %64 : vector<40x1xf32> to vector<40x128xf32>
    %67 = arith.mulf %66, %65 : vector<40x128xf32>
    %68 = arith.addf %63, %67 : vector<40x128xf32>
    %69 = vector.extract_strided_slice %54 {offsets = [0, 3], sizes = [40, 1], strides = [1, 1]} : vector<40x128xf32> to vector<40x1xf32>
    %70 = vector.extract_strided_slice %5 {offsets = [0, 384], sizes = [40, 128], strides = [1, 1]} : vector<40x896xf32> to vector<40x128xf32>
    %71 = vector.broadcast %69 : vector<40x1xf32> to vector<40x128xf32>
    %72 = arith.mulf %71, %70 : vector<40x128xf32>
    %73 = arith.addf %68, %72 : vector<40x128xf32>
    %74 = vector.extract_strided_slice %54 {offsets = [0, 4], sizes = [40, 1], strides = [1, 1]} : vector<40x128xf32> to vector<40x1xf32>
    %75 = vector.extract_strided_slice %5 {offsets = [0, 512], sizes = [40, 128], strides = [1, 1]} : vector<40x896xf32> to vector<40x128xf32>
    %76 = vector.broadcast %74 : vector<40x1xf32> to vector<40x128xf32>
    %77 = arith.mulf %76, %75 : vector<40x128xf32>
    %78 = arith.addf %73, %77 : vector<40x128xf32>
    %79 = vector.extract_strided_slice %54 {offsets = [0, 5], sizes = [40, 1], strides = [1, 1]} : vector<40x128xf32> to vector<40x1xf32>
    %80 = vector.extract_strided_slice %5 {offsets = [0, 640], sizes = [40, 128], strides = [1, 1]} : vector<40x896xf32> to vector<40x128xf32>
    %81 = vector.broadcast %79 : vector<40x1xf32> to vector<40x128xf32>
    %82 = arith.mulf %81, %80 : vector<40x128xf32>
    %83 = arith.addf %78, %82 : vector<40x128xf32>
    %c0_14 = arith.constant 0 : index
    %c0_15 = arith.constant 0 : index
    %84 = vector.load %arg4[%c0_14, %c0_15] : memref<40x128xf32, #tpu.memory_space<vmem>>, vector<40x128xf32>
    tpu.vector_store %arg4[%c0_14, %c0_15], %83 {strides = array<i32>} : memref<40x128xf32, #tpu.memory_space<vmem>>, vector<40x128xf32>,
    return
  }
  func.func @transform_0(%arg0: i32) -> (i32, i32) {
    %c0_i32 = arith.constant 0 : i32
    %c0_i32_0 = arith.constant 0 : i32
    %c0_i32_1 = arith.constant 0 : i32
    return %c0_i32, %c0_i32_0 : i32, i32
  }
  func.func @transform_1(%arg0: i32) -> (i32, i32) {
    %c0_i32 = arith.constant 0 : i32
    %c0_i32_0 = arith.constant 0 : i32
    %c0_i32_1 = arith.constant 0 : i32
    return %c0_i32, %c0_i32_0 : i32, i32
  }
  func.func @transform_2(%arg0: i32) -> (i32, i32) {
    %c0_i32 = arith.constant 0 : i32
    %c0_i32_0 = arith.constant 0 : i32
    %c0_i32_1 = arith.constant 0 : i32
    return %c0_i32, %c0_i32_0 : i32, i32
  }
  func.func @transform_3(%arg0: i32) -> (i32, i32) {
    %c0_i32 = arith.constant 0 : i32
    %c0_i32_0 = arith.constant 0 : i32
    %c0_i32_1 = arith.constant 0 : i32
    return %c0_i32, %c0_i32_0 : i32, i32
  }
}

</mosaic_0001>

<bundles_post_ra>
// kernel: moe_forward.1
= control target key start
LH: loop header
LB: loop body
LE: loop exit
PB: predicated region body
PF: predicated region fallthrough
CT: control target
= control target key end

     0   :  { %8 = vsyncpa [#allocation3], 0  ;;  %s1043_s15 = smov [#allocation2]   ;;  %s1044_s17 = smov 896   ;;  %s1483_s0 = inlined_call_operand.vmem [shape: f32[40,128], index: 0, kind: input, shape index: {}]   ;;  %s1484_s1 = inlined_call_operand.hbm [shape: f32[128,896], index: 1, kind: input, shape index: {}]   ;;  %s1485_s2 = inlined_call_operand.vmem [shape: f32[1,896], index: 2, kind: input, shape index: {}]   ;;  %s1486_s3 = inlined_call_operand.vmem [shape: f32[40,128], index: 3, kind: output, shape index: {}]  }
   0x1   :  { %s15_s14 = sshll.u32 %s1484_s1, 4  ;;  %s17_s16 = sshll.u32 %s1043_s15, 4  ;;  %s16_s14 = int_to_ptr.hbm [resolvable:$true] %s15_s14  ;;  %s18_s16 = int_to_ptr.vmem [resolvable:$true] %s17_s16 }
   0x2   :  { %s1045_s18 = smov 56  }
   0x3   :  { %23 = dma.hbm_to_vmem [thread:$0]  %s16_s14, 14336, %s18_s16, [#allocation3], %s1044_s17, %s1044_s17, %s1045_s18  }
   0x4   :  { %1041 = dma.done.wait [#allocation3], 14336  }
   0x5   :  { %1042 = vsyncadd [#allocation3], 4294952960  ;;  %v142_v0 = vld [vmem:[#allocation2 + $0x358] sm:$0xff]  ;;  %v135_v1 = vld [vmem:[#allocation2 + $0x320] sm:$0xff]  ;;  %v387_v46 = vlaneseq }
   0x6   :  { %227 = vmatpush.msra.mxu2 %v142_v0  ;;  %v128_v2 = vld [vmem:[#allocation2 + $0x2e8] sm:$0xff]  ;;  %v121_v3 = vld [vmem:[#allocation2 + $0x2b0] sm:$0xff]  ;;  %v114_v4 = vld [vmem:[#allocation2 + $0x278] sm:$0xff] }
   0x7   :  { %v107_v5 = vld [vmem:[#allocation2 + $0x240] sm:$0xff]  ;;  %v100_v6 = vld [vmem:[#allocation2 + $0x208] sm:$0xff]  ;;  %v93_v7 = vld [vmem:[#allocation2 + $0x1d0] sm:$0xff]  ;;  %v1129_v48 = vand.u32 127, %v387_v46 }
   0x8   :  { %228 = vmatpush.msra.mxu2 %v135_v1  ;;  %v86_v8 = vld [vmem:[#allocation2 + $0x198] sm:$0xff]  ;;  %v79_v9 = vld [vmem:[#allocation2 + $0x160] sm:$0xff]  ;;  %v72_v10 = vld [vmem:[#allocation2 + $0x128] sm:$0xff] }
   0x9   :  { %v65_v11 = vld [vmem:[#allocation2 + $0xf0] sm:$0xff]  ;;  %v58_v12 = vld [vmem:[#allocation2 + $0xb8] sm:$0xff]  ;;  %v51_v13 = vld [vmem:[#allocation2 + $0x80] sm:$0xff]  ;;  %vm389_vm0 = vcmp.lt.s32.totalorder %v1129_v48, 6 }
   0xa   :  { %229 = vmatpush.msra.mxu2 %v128_v2  ;;  %v44_v14 = vld [vmem:[#allocation2 + $0x48] sm:$0xff]  ;;  %v37_v15 = vld [vmem:[#allocation2 + $0x10] sm:$0xff]  ;;  %v1079_v16 = vld [vmem:[%s1483_s0] sm:$0xff] }
   0xb   :  { %v146_v17 = vld [vmem:[#allocation2 + $0x378] sm:$0xff]  ;;  %v139_v18 = vld [vmem:[#allocation2 + $0x340] sm:$0xff]  ;;  %v132_v19 = vld [vmem:[#allocation2 + $0x308] sm:$0xff] }
   0xc   :  { %230 = vmatpush.msra.mxu2 %v121_v3  ;;  %v125_v20 = vld [vmem:[#allocation2 + $0x2d0] sm:$0xff]  ;;  %v1085_v21 = vld [vmem:[%s1483_s0 + $0x8] sm:$0xff]  ;;  %v118_v22 = vld [vmem:[#allocation2 + $0x298] sm:$0xff] }
   0xd   :  { %v111_v23 = vld [vmem:[#allocation2 + $0x260] sm:$0xff]  ;;  %v104_v24 = vld [vmem:[#allocation2 + $0x228] sm:$0xff]  ;;  %v97_v25 = vld [vmem:[#allocation2 + $0x1f0] sm:$0xff] }
   0xe   :  { %231 = vmatpush.msra.mxu2 %v114_v4  ;;  %v1091_v26 = vld [vmem:[%s1483_s0 + $0x10] sm:$0xff]  ;;  %v90_v27 = vld [vmem:[#allocation2 + $0x1b8] sm:$0xff]  ;;  %v83_v28 = vld [vmem:[#allocation2 + $0x180] sm:$0xff] }
   0xf   :  { %v76_v29 = vld [vmem:[#allocation2 + $0x148] sm:$0xff]  ;;  %v69_v30 = vld [vmem:[#allocation2 + $0x110] sm:$0xff]  ;;  %v1097_v31 = vld [vmem:[%s1483_s0 + $0x18] sm:$0xff] }
  0x10   :  { %232 = vmatpush.msra.mxu2 %v107_v5  ;;  %v62_v32 = vld [vmem:[#allocation2 + $0xd8] sm:$0xff]  ;;  %v55_v33 = vld [vmem:[#allocation2 + $0xa0] sm:$0xff]  ;;  %v48_v34 = vld [vmem:[#allocation2 + $0x68] sm:$0xff] }
  0x11   :  { %v41_v35 = vld [vmem:[#allocation2 + $0x30] sm:$0xff]  ;;  %v1103_v36 = vld [vmem:[%s1483_s0 + $0x20] sm:$0xff] }
  0x12   :  { %233 = vmatpush.msra.mxu2 %v100_v6  ;;  %v147_v39 = vld [vmem:[%s1485_s2] sm:$0xff] }
  0x13   :  { %v1118_v40 = vperm.slane %v147_v39, 2  ;;  %v155_v49 = vperm.slane %v147_v39, 6 }
  0x14   :  { %234 = vmatpush.msra.mxu2 %v93_v7 }
  0x16   :  { %235 = vmatpush.msra.mxu2 %v86_v8 }
  0x18   :  { %236 = vmatpush.msra.mxu2 %v79_v9 }
  0x1a   :  { %237 = vmatpush.msra.mxu2 %v72_v10 }
  0x1c   :  { %238 = vmatpush.msra.mxu2 %v65_v11 }
  0x1e   :  { %239 = vmatpush.msra.mxu2 %v58_v12 }
  0x20   :  { %240 = vmatpush.msra.mxu2 %v51_v13 }
  0x22   :  { %241 = vmatpush.msra.mxu2 %v44_v14 }
  0x24   :  { %242 = vmatpush.msra.mxu2 %v37_v15 }
  0x25   :  { %243 = vmatmul.f32.vlgmr.msra.gmra.mxu2 %v1079_v16 }
  0x26   :  { %355 = vmatpush.msrb.mxu2 %v146_v17 }
  0x28   :  { %356 = vmatpush.msrb.mxu2 %v139_v18 }
  0x2a   :  { %357 = vmatpush.msrb.mxu2 %v132_v19 }
  0x2c   :  { %358 = vmatpush.msrb.mxu2 %v125_v20 }
  0x2d   :  { %246 = vmatmul.f32.gmra.mxu2 %v1085_v21 }
  0x2e   :  { %359 = vmatpush.msrb.mxu2 %v118_v22 }
  0x30   :  { %360 = vmatpush.msrb.mxu2 %v111_v23 }
  0x32   :  { %361 = vmatpush.msrb.mxu2 %v104_v24 }
  0x34   :  { %362 = vmatpush.msrb.mxu2 %v97_v25 }
  0x35   :  { %249 = vmatmul.f32.gmra.mxu2 %v1091_v26 }
  0x36   :  { %363 = vmatpush.msrb.mxu2 %v90_v27 }
  0x38   :  { %364 = vmatpush.msrb.mxu2 %v83_v28 }
  0x3a   :  { %365 = vmatpush.msrb.mxu2 %v76_v29 }
  0x3c   :  { %366 = vmatpush.msrb.mxu2 %v69_v30 }
  0x3d   :  { %252 = vmatmul.f32.gmra.mxu2 %v1097_v31 }
  0x3e   :  { %367 = vmatpush.msrb.mxu2 %v62_v32 }
  0x40   :  { %368 = vmatpush.msrb.mxu2 %v55_v33 }
  0x42   :  { %369 = vmatpush.msrb.mxu2 %v48_v34 }
  0x44   :  { %370 = vmatpush.msrb.mxu2 %v41_v35 }
  0x45   :  { %255 = vmatmul.f32.gmra.mxu2 %v1103_v36 }
  0x4d   :  { %371 = vmatmul.f32.vlgmr.msrb.gmra.mxu2 %v1079_v16 }
  0x55   :  { %374 = vmatmul.f32.gmra.mxu2 %v1085_v21 }
  0x5d   :  { %377 = vmatmul.f32.gmra.mxu2 %v1091_v26 }
  0x65   :  { %380 = vmatmul.f32.gmra.mxu2 %v1097_v31 }
  0x6d   :  { %383 = vmatmul.f32.gmra.mxu2 %v1103_v36 }
  0xa8   :  { %v1111_v37 = vpop.f32.mrf.mxu2 }
  0xb0   :  { %v1113_v38 = vpop.f32.mrf.mxu2 }
  0xb8   :  { %v250_v41 = vpop.f32.mrf.mxu2 }
  0xb9   :  { %v1121_v42 = vadd.f32 %v250_v41, %v1118_v40 }
  0xc0   :  { %v253_v43 = vpop.f32.mrf.mxu2 }
  0xc1   :  { %v1124_v44 = vadd.f32 %v253_v43, %v1118_v40 }
  0xc8   :  { %v256_v45 = vpop.f32.mrf.mxu2 }
  0xc9   :  { %v1127_v47 = vadd.f32 %v256_v45, %v1118_v40 }
  0xd0   :  { %v372_v50 = vpop.f32.mrf.mxu2 }
  0xd1   :  { %v373_v51 = vadd.f32 %v372_v50, %v155_v49 }
  0xd3   :  { %v390_v52 = vsel %vm389_vm0, %v373_v51, -inf }
  0xd4   :  { %395 = vmax.xlane.f32.xlu0 %v390_v52 }
  0xd8   :  { %v375_v53 = vpop.f32.mrf.mxu2 }
  0xd9   :  { %v376_v54 = vadd.f32 %v375_v53, %v155_v49 }
  0xdb   :  { %v391_v55 = vsel %vm389_vm0, %v376_v54, -inf }
  0xdc   :  { %397 = vmax.xlane.f32.xlu0 %v391_v55 }
  0xe0   :  { %v378_v56 = vpop.f32.mrf.mxu2 }
  0xe1   :  { %v379_v57 = vadd.f32 %v378_v56, %v155_v49 }
  0xe3   :  { %v392_v58 = vsel %vm389_vm0, %v379_v57, -inf }
  0xe4   :  { %399 = vmax.xlane.f32.xlu1 %v392_v58 }
  0xe8   :  { %v381_v59 = vpop.f32.mrf.mxu2 }
  0xe9   :  { %v382_v60 = vadd.f32 %v381_v59, %v155_v49 }
  0xeb   :  { %v393_v61 = vsel %vm389_vm0, %v382_v60, -inf }
  0xec   :  { %401 = vmax.xlane.f32.xlu1 %v393_v61 }
  0xf0   :  { %v384_v62 = vpop.f32.mrf.mxu2 }
  0xf1   :  { %v385_v63 = vadd.f32 %v384_v62, %v155_v49 }
  0xf3   :  { %v394_v0 = vsel %vm389_vm0, %v385_v63, -inf }
  0xf4   :  { %403 = vmax.xlane.f32.xlu2 %v394_v0 }
 0x147   :  { %v396_v1 = vpop.xlane.xlu0 %395 }
 0x148   :  { %v405_v2 = vsub.f32 %v390_v52, %v396_v1 }
 0x14a   :  { %v410_v3 = vmul.f32 1.442695, %v405_v2 }
 0x14c   :  { %991 = vpow2.f32 %v410_v3 }
 0x14f   :  { %v398_v4 = vpop.xlane.xlu0 %397 }
 0x150   :  { %v406_v5 = vsub.f32 %v391_v55, %v398_v4 }
 0x152   :  { %v992_v6 = vpop.eup %991  ;;  %v412_v7 = vmul.f32 1.442695, %v406_v5 }
 0x153   :  { %420 = vadd.xlane.f32.xlu2 %v992_v6 }
 0x154   :  { %993 = vpow2.f32 %v412_v7 }
 0x157   :  { %v400_v8 = vpop.xlane.xlu1 %399 }
 0x158   :  { %v407_v9 = vsub.f32 %v392_v58, %v400_v8 }
 0x15a   :  { %v994_v10 = vpop.eup %993  ;;  %v414_v11 = vmul.f32 1.442695, %v407_v9 }
 0x15b   :  { %422 = vadd.xlane.f32.xlu0 %v994_v10 }
 0x15c   :  { %995 = vpow2.f32 %v414_v11 }
 0x15f   :  { %v402_v12 = vpop.xlane.xlu1 %401 }
 0x160   :  { %v408_v13 = vsub.f32 %v393_v61, %v402_v12 }
 0x162   :  { %v1142_v14 = vpop.eup %995  ;;  %v416_v15 = vmul.f32 1.442695, %v408_v13 }
 0x163   :  { %424 = vadd.xlane.f32.xlu1 %v1142_v14 }
 0x164   :  { %997 = vpow2.f32 %v416_v15 }
 0x167   :  { %v404_v17 = vpop.xlane.xlu2 %403 }
 0x168   :  { %v409_v18 = vsub.f32 %v394_v0, %v404_v17 }
 0x16a   :  { %v1145_v19 = vpop.eup %997  ;;  %v418_v20 = vmul.f32 1.442695, %v409_v18 }
 0x16b   :  { %426 = vadd.xlane.f32.xlu2 %v1145_v19 }
 0x16c   :  { %999 = vpow2.f32 %v418_v20 }
 0x172   :  { %v1148_v22 = vpop.eup %999 }
 0x173   :  { %428 = vadd.xlane.f32.xlu0 %v1148_v22 }
 0x1c6   :  { %v421_v23 = vpop.xlane.xlu2 %420 }
 0x1c7   :  { %1001 = vrcp.f32 %v421_v23  ;;  %v441_v29 = vand.u32 2147483648, %v421_v23  ;;  %v439_v32 = vand.u32 2147483647, %v421_v23  ;;  %vm435_vm2 = vweird.f32 %v421_v23 }
 0x1c9   :  { %v442_v35 = vor.u32 1.1754944e-38, %v441_v29  ;;  %vm440_vm4 = vcmp.eq.f32.partialorder %v439_v32, 8.507059e+37 }
 0x1cd   :  { %v1002_v24 = vpop.eup %1001 }
 0x1ce   :  { %v431_v25 = vmul.f32 %v1002_v24, %v421_v23  ;;  %v423_v27 = vpop.xlane.xlu0 %422  ;;  %vm436_vm1 = vweird.f32 %v1002_v24 }
 0x1cf   :  { %1003 = vrcp.f32 %v423_v27  ;;  %vm437_vm3 = vmor %vm435_vm2, %vm436_vm1  ;;  %v455_v50 = vand.u32 2147483648, %v423_v27  ;;  %v453_v52 = vand.u32 2147483647, %v423_v27  ;;  %vm449_vm6 = vweird.f32 %v423_v27 }
 0x1d0   :  { %v432_v28 = vsub.f32 1.0, %v431_v25 }
 0x1d1   :  { %v456_v55 = vor.u32 1.1754944e-38, %v455_v50  ;;  %vm454_vm8 = vcmp.eq.f32.partialorder %v453_v52, 8.507059e+37 }
 0x1d2   :  { %v433_v30 = vmul.f32 %v1002_v24, %v432_v28 }
 0x1d4   :  { %v434_v33 = vadd.f32 %v1002_v24, %v433_v30 }
 0x1d5   :  { %v1004_v34 = vpop.eup %1003 }
 0x1d6   :  { %v445_v39 = vmul.f32 %v1004_v34, %v423_v27  ;;  %v425_v41 = vpop.xlane.xlu1 %424  ;;  %v438_v43 = vsel %vm437_vm3, %v1002_v24, %v434_v33  ;;  %vm450_vm5 = vweird.f32 %v1004_v34 }
 0x1d7   :  { %1005 = vrcp.f32 %v425_v41  ;;  %v443_v45 = vsel %vm440_vm4, %v442_v35, %v438_v43  ;;  %vm451_vm7 = vmor %vm449_vm6, %vm450_vm5  ;;  %v469_v62 = vand.u32 2147483648, %v425_v41  ;;  %v467_v0 = vand.u32 2147483647, %v425_v41 }
 0x1d8   :  { %v446_v46 = vsub.f32 1.0, %v445_v39  ;;  %v1151_v49 = vmul.f32 %v992_v6, %v443_v45  ;;  %vm463_vm10 = vweird.f32 %v425_v41 }
 0x1d9   :  { %v470_v3 = vor.u32 1.1754944e-38, %v469_v62  ;;  %vm468_vm12 = vcmp.eq.f32.partialorder %v467_v0, 8.507059e+37 }
 0x1da   :  { %v447_v51 = vmul.f32 %v1004_v34, %v446_v46  ;;  %505 = vmax.xlane.f32.xlu1 %v1151_v49 }
 0x1dc   :  { %v448_v53 = vadd.f32 %v1004_v34, %v447_v51 }
 0x1dd   :  { %v1006_v54 = vpop.eup %1005 }
 0x1de   :  { %v459_v56 = vmul.f32 %v1006_v54, %v425_v41  ;;  %v427_v57 = vpop.xlane.xlu2 %426  ;;  %v452_v58 = vsel %vm451_vm7, %v1004_v34, %v448_v53  ;;  %vm464_vm9 = vweird.f32 %v1006_v54 }
 0x1df   :  { %1007 = vrcp.f32 %v427_v57  ;;  %v457_v59 = vsel %vm454_vm8, %v456_v55, %v452_v58  ;;  %vm465_vm11 = vmor %vm463_vm10, %vm464_vm9  ;;  %v481_v12 = vand.u32 2147483647, %v427_v57  ;;  %vm477_vm14 = vweird.f32 %v427_v57 }
 0x1e0   :  { %v460_v60 = vsub.f32 1.0, %v459_v56  ;;  %v1154_v61 = vmul.f32 %v994_v10, %v457_v59  ;;  %v483_v10 = vand.u32 2147483648, %v427_v57 }
 0x1e1   :  { %vm482_vm0 = vcmp.eq.f32.partialorder %v481_v12, 8.507059e+37 }
 0x1e2   :  { %v461_v63 = vmul.f32 %v1006_v54, %v460_v60  ;;  %507 = vmax.xlane.f32.xlu2 %v1154_v61  ;;  %v484_v17 = vor.u32 1.1754944e-38, %v483_v10 }
 0x1e4   :  { %v462_v1 = vadd.f32 %v1006_v54, %v461_v63 }
 0x1e5   :  { %v1008_v2 = vpop.eup %1007 }
 0x1e6   :  { %v473_v4 = vmul.f32 %v1008_v2, %v427_v57  ;;  %v429_v5 = vpop.xlane.xlu0 %428  ;;  %v466_v6 = vsel %vm465_vm11, %v1006_v54, %v462_v1  ;;  %vm478_vm13 = vweird.f32 %v1008_v2 }
 0x1e7   :  { %1009 = vrcp.f32 %v429_v5  ;;  %v471_v7 = vsel %vm468_vm12, %v470_v3, %v466_v6  ;;  %vm479_vm15 = vmor %vm477_vm14, %vm478_vm13  ;;  %v495_v28 = vand.u32 2147483647, %v429_v5  ;;  %vm491_vm2 = vweird.f32 %v429_v5 }
 0x1e8   :  { %v474_v8 = vsub.f32 1.0, %v473_v4  ;;  %v1158_v9 = vmul.f32 %v1142_v14, %v471_v7  ;;  %v497_v14 = vand.u32 2147483648, %v429_v5 }
 0x1e9   :  { %vm496_vm4 = vcmp.eq.f32.partialorder %v495_v28, 8.507059e+37 }
 0x1ea   :  { %v475_v11 = vmul.f32 %v1008_v2, %v474_v8  ;;  %509 = vmax.xlane.f32.xlu0 %v1158_v9  ;;  %v498_v30 = vor.u32 1.1754944e-38, %v497_v14 }
 0x1ec   :  { %v476_v13 = vadd.f32 %v1008_v2, %v475_v11 }
 0x1ed   :  { %v1010_v15 = vpop.eup %1009 }
 0x1ee   :  { %v487_v18 = vmul.f32 %v1010_v15, %v429_v5  ;;  %v480_v20 = vsel %vm479_vm15, %v1008_v2, %v476_v13  ;;  %vm492_vm1 = vweird.f32 %v1010_v15 }
 0x1ef   :  { %v485_v23 = vsel %vm482_vm0, %v484_v17, %v480_v20  ;;  %vm493_vm3 = vmor %vm491_vm2, %vm492_vm1 }
 0x1f0   :  { %v488_v24 = vsub.f32 1.0, %v487_v18  ;;  %v1162_v25 = vmul.f32 %v1145_v19, %v485_v23 }
 0x1f2   :  { %v489_v27 = vmul.f32 %v1010_v15, %v488_v24  ;;  %511 = vmax.xlane.f32.xlu1 %v1162_v25 }
 0x1f4   :  { %v490_v29 = vadd.f32 %v1010_v15, %v489_v27 }
 0x1f6   :  { %v494_v32 = vsel %vm493_vm3, %v1010_v15, %v490_v29 }
 0x1f7   :  { %v499_v33 = vsel %vm496_vm4, %v498_v30, %v494_v32 }
 0x1f8   :  { %v1166_v34 = vmul.f32 %v1148_v22, %v499_v33 }
 0x1fa   :  { %513 = vmax.xlane.f32.xlu2 %v1166_v34 }
 0x24d   :  { %v1169_v19 = vpop.xlane.xlu1 %505 }
 0x24e   :  { %vm515_vm5 = vcmp.eq.f32.partialorder %v1151_v49, %v1169_v19 }
 0x24f   :  { %v520_v35 = vsel %vm515_vm5, %v1129_v48, 128 }
 0x250   :  { %v526_v39 = vshra.s32 %v520_v35, 16  ;;  %v525_v63 = vand.u32 65535, %v520_v35 }
 0x252   :  { %v528_v41 = vcvt.s32.f32 %v526_v39  ;;  %v527_v1 = vcvt.s32.f32 %v525_v63 }
 0x254   :  { %529 = vmin.xlane.f32.xlu0 %v528_v41 }
 0x255   :  { %v1174_v43 = vpop.xlane.xlu2 %507 }
 0x256   :  { %vm516_vm6 = vcmp.eq.f32.partialorder %v1154_v61, %v1174_v43 }
 0x257   :  { %v521_v22 = vsel %vm516_vm6, %v1129_v48, 128 }
 0x258   :  { %v540_v45 = vshra.s32 %v521_v22, 16  ;;  %v539_v3 = vand.u32 65535, %v521_v22 }
 0x25a   :  { %v542_v46 = vcvt.s32.f32 %v540_v45  ;;  %v541_v5 = vcvt.s32.f32 %v539_v3 }
 0x25c   :  { %543 = vmin.xlane.f32.xlu1 %v542_v46 }
 0x25d   :  { %v1179_v50 = vpop.xlane.xlu0 %509 }
 0x25e   :  { %vm517_vm7 = vcmp.eq.f32.partialorder %v1158_v9, %v1179_v50 }
 0x25f   :  { %v522_v51 = vsel %vm517_vm7, %v1129_v48, 128 }
 0x260   :  { %v554_v52 = vshra.s32 %v522_v51, 16  ;;  %v553_v7 = vand.u32 65535, %v522_v51 }
 0x262   :  { %v556_v53 = vcvt.s32.f32 %v554_v52  ;;  %v555_v10 = vcvt.s32.f32 %v553_v7 }
 0x264   :  { %557 = vmin.xlane.f32.xlu2 %v556_v53 }
 0x265   :  { %v1184_v54 = vpop.xlane.xlu1 %511 }
 0x266   :  { %vm518_vm8 = vcmp.eq.f32.partialorder %v1162_v25, %v1184_v54 }
 0x267   :  { %v523_v55 = vsel %vm518_vm8, %v1129_v48, 128 }
 0x268   :  { %v568_v56 = vshra.s32 %v523_v55, 16  ;;  %v567_v12 = vand.u32 65535, %v523_v55 }
 0x26a   :  { %v570_v57 = vcvt.s32.f32 %v568_v56  ;;  %v569_v15 = vcvt.s32.f32 %v567_v12 }
 0x26c   :  { %571 = vmin.xlane.f32.xlu0 %v570_v57 }
 0x26d   :  { %v1189_v58 = vpop.xlane.xlu2 %513 }
 0x26e   :  { %vm519_vm9 = vcmp.eq.f32.partialorder %v1166_v34, %v1189_v58 }
 0x26f   :  { %v524_v59 = vsel %vm519_vm9, %v1129_v48, 128 }
 0x270   :  { %v582_v60 = vshra.s32 %v524_v59, 16  ;;  %v581_v18 = vand.u32 65535, %v524_v59 }
 0x272   :  { %v584_v62 = vcvt.s32.f32 %v582_v60  ;;  %v583_v23 = vcvt.s32.f32 %v581_v18 }
 0x274   :  { %585 = vmin.xlane.f32.xlu1 %v584_v62 }
 0x2c7   :  { %v530_v0 = vpop.xlane.xlu0 %529 }
 0x2c8   :  { %vm531_vm10 = vcmp.eq.f32.partialorder %v528_v41, %v530_v0  ;;  %v536_v14 = vcvt.f32.s32 %v530_v0 }
 0x2c9   :  { %v532_v2 = vsel %vm531_vm10, %v527_v1, inf }
 0x2ca   :  { %533 = vmin.xlane.f32.xlu2 %v532_v2  ;;  %v537_v28 = vshll.u32 %v536_v14, 16 }
 0x2cf   :  { %v544_v4 = vpop.xlane.xlu1 %543 }
 0x2d0   :  { %vm545_vm11 = vcmp.eq.f32.partialorder %v542_v46, %v544_v4  ;;  %v550_v32 = vcvt.f32.s32 %v544_v4 }
 0x2d1   :  { %v546_v6 = vsel %vm545_vm11, %v541_v5, inf }
 0x2d2   :  { %547 = vmin.xlane.f32.xlu0 %v546_v6  ;;  %v551_v39 = vshll.u32 %v550_v32, 16 }
 0x2d7   :  { %v558_v8 = vpop.xlane.xlu2 %557 }
 0x2d8   :  { %vm559_vm12 = vcmp.eq.f32.partialorder %v556_v53, %v558_v8  ;;  %v564_v45 = vcvt.f32.s32 %v558_v8 }
 0x2d9   :  { %v560_v11 = vsel %vm559_vm12, %v555_v10, inf }
 0x2da   :  { %561 = vmin.xlane.f32.xlu1 %v560_v11  ;;  %v565_v52 = vshll.u32 %v564_v45, 16 }
 0x2df   :  { %v572_v13 = vpop.xlane.xlu0 %571 }
 0x2e0   :  { %vm573_vm13 = vcmp.eq.f32.partialorder %v570_v57, %v572_v13  ;;  %v578_v55 = vcvt.f32.s32 %v572_v13 }
 0x2e1   :  { %v574_v17 = vsel %vm573_vm13, %v569_v15, inf }
 0x2e2   :  { %575 = vmin.xlane.f32.xlu2 %v574_v17  ;;  %v579_v59 = vshll.u32 %v578_v55, 16  ;;  %v127_v55 = vld [vmem:[#allocation2 + $0x2e0] sm:$0xff] }
 0x2e7   :  { %v586_v20 = vpop.xlane.xlu1 %585 }
 0x2e8   :  { %vm587_vm14 = vcmp.eq.f32.partialorder %v584_v62, %v586_v20  ;;  %v592_v62 = vcvt.f32.s32 %v586_v20 }
 0x2e9   :  { %v588_v24 = vsel %vm587_vm14, %v583_v23, inf }
 0x2ea   :  { %589 = vmin.xlane.f32.xlu0 %v588_v24  ;;  %v593_v1 = vshll.u32 %v592_v62, 16 }
 0x33d   :  { %v534_v27 = vpop.xlane.xlu2 %533 }
 0x33e   :  { %v535_v29 = vcvt.f32.s32 %v534_v27 }
 0x340   :  { %v1194_v30 = vadd.s32 %v537_v28, %v535_v29 }
 0x342   :  { %vm595_vm15 = vcmp.eq.s32.totalorder %v1129_v48, %v1194_v30 }
 0x343   :  { %v600_v33 = vsel %vm595_vm15, -inf, %v1151_v49 }
 0x344   :  { %605 = vmax.xlane.f32.xlu1 %v600_v33 }
 0x345   :  { %v548_v35 = vpop.xlane.xlu0 %547 }
 0x346   :  { %v549_v41 = vcvt.f32.s32 %v548_v35 }
 0x348   :  { %v1202_v22 = vadd.s32 %v551_v39, %v549_v41  ;;  %v140_v39 = vld [vmem:[#allocation2 + $0x348] sm:$0xff]  ;;  %v133_v41 = vld [vmem:[#allocation2 + $0x310] sm:$0xff] }
 0x349   :  { %935 = vmatpush.msra.mxu3 %v140_v39  ;;  %163 = vmatpush.msra.mxu0 %v140_v39 }
 0x34a   :  { %vm596_vm0 = vcmp.eq.s32.totalorder %v1129_v48, %v1202_v22 }
 0x34b   :  { %v601_v46 = vsel %vm596_vm0, -inf, %v1154_v61  ;;  %936 = vmatpush.msra.mxu3 %v133_v41  ;;  %164 = vmatpush.msra.mxu0 %v133_v41 }
 0x34c   :  { %607 = vmax.xlane.f32.xlu2 %v601_v46 }
 0x34d   :  { %v562_v51 = vpop.xlane.xlu1 %561 }
 0x34e   :  { %v563_v53 = vcvt.f32.s32 %v562_v51  ;;  %v141_v51 = vld [vmem:[#allocation2 + $0x350] sm:$0xff] }
 0x34f   :  { %195 = vmatpush.msra.mxu1 %v141_v51  ;;  %v49_v51 = vld [vmem:[#allocation2 + $0x70] sm:$0xff] }
 0x350   :  { %v1210_v49 = vadd.s32 %v565_v52, %v563_v53  ;;  %v134_v52 = vld [vmem:[#allocation2 + $0x318] sm:$0xff]  ;;  %v119_v53 = vld [vmem:[#allocation2 + $0x2a0] sm:$0xff] }
 0x351   :  { %196 = vmatpush.msra.mxu1 %v134_v52  ;;  %v57_v52 = vld [vmem:[#allocation2 + $0xb0] sm:$0xff] }
 0x352   :  { %vm597_vm1 = vcmp.eq.s32.totalorder %v1129_v48, %v1210_v49 }
 0x353   :  { %v602_v56 = vsel %vm597_vm1, -inf, %v1158_v9  ;;  %197 = vmatpush.msra.mxu1 %v127_v55  ;;  %v42_v55 = vld [vmem:[#allocation2 + $0x38] sm:$0xff] }
 0x354   :  { %609 = vmax.xlane.f32.xlu0 %v602_v56 }
 0x355   :  { %v576_v57 = vpop.xlane.xlu2 %575 }
 0x356   :  { %v577_v60 = vcvt.f32.s32 %v576_v57 }
 0x358   :  { %v1218_v61 = vadd.s32 %v579_v59, %v577_v60  ;;  %v112_v59 = vld [vmem:[#allocation2 + $0x268] sm:$0xff] }
 0x359   :  { %v120_v60 = vld [vmem:[#allocation2 + $0x2a8] sm:$0xff] }
 0x35a   :  { %vm598_vm2 = vcmp.eq.s32.totalorder %v1129_v48, %v1218_v61  ;;  %198 = vmatpush.msra.mxu1 %v120_v60 }
 0x35b   :  { %v603_v63 = vsel %vm598_vm2, -inf, %v1162_v25 }
 0x35c   :  { %611 = vmax.xlane.f32.xlu1 %v603_v63 }
 0x35d   :  { %v590_v0 = vpop.xlane.xlu0 %589 }
 0x35e   :  { %v591_v2 = vcvt.f32.s32 %v590_v0  ;;  %v113_v0 = vld [vmem:[#allocation2 + $0x270] sm:$0xff] }
 0x35f   :  { %199 = vmatpush.msra.mxu1 %v113_v0 }
 0x360   :  { %v1226_v9 = vadd.s32 %v593_v1, %v591_v2  ;;  %v98_v2 = vld [vmem:[#allocation2 + $0x1f8] sm:$0xff] }
 0x362   :  { %vm599_vm3 = vcmp.eq.s32.totalorder %v1129_v48, %v1226_v9 }
 0x363   :  { %v604_v3 = vsel %vm599_vm3, -inf, %v1166_v34 }
 0x364   :  { %613 = vmax.xlane.f32.xlu2 %v604_v3 }
 0x3b7   :  { %v1234_v4 = vpop.xlane.xlu1 %605 }
 0x3b8   :  { %vm615_vm4 = vcmp.eq.f32.partialorder %v600_v33, %v1234_v4 }
 0x3b9   :  { %v620_v25 = vsel %vm615_vm4, %v1129_v48, 128 }
 0x3ba   :  { %v626_v5 = vshra.s32 %v620_v25, 16  ;;  %v625_v29 = vand.u32 65535, %v620_v25  ;;  %v91_v25 = vld [vmem:[#allocation2 + $0x1c0] sm:$0xff] }
 0x3bc   :  { %v628_v6 = vcvt.s32.f32 %v626_v5  ;;  %v627_v33 = vcvt.s32.f32 %v625_v29  ;;  %v99_v5 = vld [vmem:[#allocation2 + $0x200] sm:$0xff]  ;;  %v70_v29 = vld [vmem:[#allocation2 + $0x118] sm:$0xff] }
 0x3be   :  { %629 = vmin.xlane.f32.xlu0 %v628_v6 }
 0x3bf   :  { %v1238_v7 = vpop.xlane.xlu2 %607 }
 0x3c0   :  { %vm616_vm5 = vcmp.eq.f32.partialorder %v601_v46, %v1238_v7  ;;  %v126_v46 = vld [vmem:[#allocation2 + $0x2d8] sm:$0xff] }
 0x3c1   :  { %v621_v8 = vsel %vm616_vm5, %v1129_v48, 128  ;;  %937 = vmatpush.msra.mxu3 %v126_v46  ;;  %165 = vmatpush.msra.mxu0 %v126_v46 }
 0x3c2   :  { %v640_v10 = vshra.s32 %v621_v8, 16  ;;  %v639_v45 = vand.u32 65535, %v621_v8 }
 0x3c3   :  { %938 = vmatpush.msra.mxu3 %v119_v53  ;;  %166 = vmatpush.msra.mxu0 %v119_v53 }
 0x3c4   :  { %v642_v11 = vcvt.s32.f32 %v640_v10  ;;  %v641_v57 = vcvt.s32.f32 %v639_v45  ;;  %v84_v10 = vld [vmem:[#allocation2 + $0x188] sm:$0xff] }
 0x3c5   :  { %939 = vmatpush.msra.mxu3 %v112_v59  ;;  %167 = vmatpush.msra.mxu0 %v112_v59  ;;  %v56_v45 = vld [vmem:[#allocation2 + $0xa8] sm:$0xff]  ;;  %v43_v59 = vld [vmem:[#allocation2 + $0x40] sm:$0xff] }
 0x3c6   :  { %643 = vmin.xlane.f32.xlu2 %v642_v11 }
 0x3c7   :  { %v1242_v34 = vpop.xlane.xlu0 %609 }
 0x3c8   :  { %vm617_vm6 = vcmp.eq.f32.partialorder %v602_v56, %v1242_v34 }
 0x3c9   :  { %v622_v12 = vsel %vm617_vm6, %v1129_v48, 128 }
 0x3ca   :  { %v654_v13 = vshra.s32 %v622_v12, 16  ;;  %v653_v1 = vand.u32 65535, %v622_v12 }
 0x3cc   :  { %v1246_v15 = vcvt.s32.f32 %v654_v13  ;;  %v655_v8 = vcvt.s32.f32 %v653_v1  ;;  %v77_v13 = vld [vmem:[#allocation2 + $0x150] sm:$0xff]  ;;  %v136_v1 = vld [vmem:[#allocation2 + $0x328] sm:$0xff] }
 0x3ce   :  { %657 = vmin.xlane.f32.xlu1 %v1246_v15 }
 0x3cf   :  { %v1249_v17 = vpop.xlane.xlu1 %611 }
 0x3d0   :  { %vm618_vm7 = vcmp.eq.f32.partialorder %v603_v63, %v1249_v17  ;;  %v105_v63 = vld [vmem:[#allocation2 + $0x230] sm:$0xff] }
 0x3d1   :  { %v1253_v18 = vsel %vm618_vm7, %v1129_v48, 128  ;;  %940 = vmatpush.msra.mxu3 %v105_v63  ;;  %168 = vmatpush.msra.mxu0 %v105_v63  ;;  %v143_v63 = vld [vmem:[#allocation2 + $0x360] sm:$0xff] }
 0x3d2   :  { %v668_v20 = vshra.s32 %v1253_v18, 16 }
 0x3d3   :  { %941 = vmatpush.msra.mxu3 %v98_v2  ;;  %169 = vmatpush.msra.mxu0 %v98_v2  ;;  %v144_v2 = vld [vmem:[#allocation2 + $0x368] sm:$0xff] }
 0x3d4   :  { %v1256_v23 = vcvt.s32.f32 %v668_v20  ;;  %v85_v20 = vld [vmem:[#allocation2 + $0x190] sm:$0xff] }
 0x3d5   :  { %942 = vmatpush.msra.mxu3 %v91_v25  ;;  %170 = vmatpush.msra.mxu0 %v91_v25  ;;  %v145_v25 = vld [vmem:[#allocation2 + $0x370] sm:$0xff] }
 0x3d6   :  { %671 = vmin.xlane.f32.xlu0 %v1256_v23 }
 0x3d7   :  { %v1259_v24 = vpop.xlane.xlu2 %613  ;;  %943 = vmatpush.msra.mxu3 %v84_v10  ;;  %171 = vmatpush.msra.mxu0 %v84_v10  ;;  %v130_v10 = vld [vmem:[#allocation2 + $0x2f8] sm:$0xff] }
 0x3d8   :  { %vm619_vm8 = vcmp.eq.f32.partialorder %v604_v3, %v1259_v24  ;;  %v106_v3 = vld [vmem:[#allocation2 + $0x238] sm:$0xff] }
 0x3d9   :  { %v1263_v14 = vsel %vm619_vm8, %v1129_v48, 128  ;;  %200 = vmatpush.msra.mxu1 %v106_v3  ;;  %944 = vmatpush.msra.mxu3 %v77_v13  ;;  %v129_v3 = vld [vmem:[#allocation2 + $0x2f0] sm:$0xff] }
 0x3da   :  { %v682_v27 = vshra.s32 %v1263_v14, 16  ;;  %172 = vmatpush.msra.mxu0 %v77_v13  ;;  %v681_v53 = vand.u32 65535, %v1263_v14  ;;  %v36_v14 = vld [vmem:[#allocation2 + $0x8] sm:$0xff]  ;;  %v123_v13 = vld [vmem:[#allocation2 + $0x2c0] sm:$0xff] }
 0x3db   :  { %201 = vmatpush.msra.mxu1 %v99_v5  ;;  %945 = vmatpush.msra.mxu3 %v70_v29  ;;  %v137_v5 = vld [vmem:[#allocation2 + $0x330] sm:$0xff] }
 0x3dc   :  { %v1266_v28 = vcvt.s32.f32 %v682_v27  ;;  %v667_v27 = vand.u32 65535, %v1253_v18  ;;  %173 = vmatpush.msra.mxu0 %v70_v29  ;;  %v64_v18 = vld [vmem:[#allocation2 + $0xe8] sm:$0xff]  ;;  %v101_v29 = vld [vmem:[#allocation2 + $0x210] sm:$0xff] }
 0x3de   :  { %685 = vmin.xlane.f32.xlu2 %v1266_v28  ;;  %v669_v41 = vcvt.s32.f32 %v667_v27  ;;  %v116_v27 = vld [vmem:[#allocation2 + $0x288] sm:$0xff] }
 0x431   :  { %v1269_v32 = vpop.xlane.xlu0 %629 }
 0x432   :  { %vm631_vm9 = vcmp.eq.f32.partialorder %v628_v6, %v1269_v32 }
 0x433   :  { %v632_v35 = vsel %vm631_vm9, %v627_v33, inf  ;;  %v78_v33 = vld [vmem:[#allocation2 + $0x158] sm:$0xff] }
 0x434   :  { %633 = vmin.xlane.f32.xlu1 %v632_v35  ;;  %v71_v35 = vld [vmem:[#allocation2 + $0x120] sm:$0xff] }
 0x439   :  { %v1272_v56 = vpop.xlane.xlu2 %643 }
 0x43a   :  { %vm645_vm10 = vcmp.eq.f32.partialorder %v642_v11, %v1272_v56  ;;  %v92_v11 = vld [vmem:[#allocation2 + $0x1c8] sm:$0xff] }
 0x43b   :  { %v646_v62 = vsel %vm645_vm10, %v641_v57, inf  ;;  %202 = vmatpush.msra.mxu1 %v92_v11  ;;  %v50_v57 = vld [vmem:[#allocation2 + $0x78] sm:$0xff]  ;;  %v115_v11 = vld [vmem:[#allocation2 + $0x280] sm:$0xff] }
 0x43c   :  { %647 = vmin.xlane.f32.xlu0 %v646_v62  ;;  %v683_v62 = vcvt.s32.f32 %v681_v53  ;;  %v73_v53 = vld [vmem:[#allocation2 + $0x130] sm:$0xff] }
 0x43d   :  { %203 = vmatpush.msra.mxu1 %v85_v20  ;;  %v108_v20 = vld [vmem:[#allocation2 + $0x248] sm:$0xff] }
 0x43f   :  { %204 = vmatpush.msra.mxu1 %v78_v33  ;;  %v109_v33 = vld [vmem:[#allocation2 + $0x250] sm:$0xff] }
 0x441   :  { %v1275_v6 = vpop.xlane.xlu1 %657  ;;  %205 = vmatpush.msra.mxu1 %v71_v35  ;;  %v117_v35 = vld [vmem:[#allocation2 + $0x290] sm:$0xff] }
 0x442   :  { %vm659_vm11 = vcmp.eq.f32.partialorder %v1246_v15, %v1275_v6  ;;  %v63_v15 = vld [vmem:[#allocation2 + $0xe0] sm:$0xff] }
 0x443   :  { %v660_v12 = vsel %vm659_vm11, %v655_v8, inf  ;;  %946 = vmatpush.msra.mxu3 %v63_v15  ;;  %174 = vmatpush.msra.mxu0 %v63_v15  ;;  %v122_v8 = vld [vmem:[#allocation2 + $0x2b8] sm:$0xff] }
 0x444   :  { %661 = vmin.xlane.f32.xlu2 %v660_v12  ;;  %206 = vmatpush.msra.mxu1 %v64_v18  ;;  %v131_v12 = vld [vmem:[#allocation2 + $0x300] sm:$0xff]  ;;  %v94_v15 = vld [vmem:[#allocation2 + $0x1d8] sm:$0xff] }
 0x445   :  { %947 = vmatpush.msra.mxu3 %v56_v45  ;;  %175 = vmatpush.msra.mxu0 %v56_v45  ;;  %v87_v45 = vld [vmem:[#allocation2 + $0x1a0] sm:$0xff]  ;;  %v110_v18 = vld [vmem:[#allocation2 + $0x258] sm:$0xff] }
 0x446   :  { %207 = vmatpush.msra.mxu1 %v57_v52  ;;  %v88_v52 = vld [vmem:[#allocation2 + $0x1a8] sm:$0xff] }
 0x447   :  { %948 = vmatpush.msra.mxu3 %v49_v51  ;;  %176 = vmatpush.msra.mxu0 %v49_v51  ;;  %v80_v51 = vld [vmem:[#allocation2 + $0x168] sm:$0xff] }
 0x448   :  { %208 = vmatpush.msra.mxu1 %v50_v57  ;;  %v66_v57 = vld [vmem:[#allocation2 + $0xf8] sm:$0xff] }
 0x449   :  { %v1280_v39 = vpop.xlane.xlu0 %671  ;;  %949 = vmatpush.msra.mxu3 %v42_v55  ;;  %177 = vmatpush.msra.mxu0 %v42_v55  ;;  %v103_v55 = vld [vmem:[#allocation2 + $0x220] sm:$0xff] }
 0x44a   :  { %vm673_vm12 = vcmp.eq.f32.partialorder %v1256_v23, %v1280_v39  ;;  %v35_v23 = vld [vmem:[#allocation2] sm:$0xff]  ;;  %209 = vmatpush.msra.mxu1 %v43_v59  ;;  %v74_v59 = vld [vmem:[#allocation2 + $0x138] sm:$0xff]  ;;  %v678_v9 = vcvt.f32.s32 %v1280_v39 }
 0x44b   :  { %v674_v46 = vsel %vm673_vm12, %v669_v41, inf  ;;  %950 = vmatpush.msra.mxu3 %v35_v23  ;;  %178 = vmatpush.msra.mxu0 %v35_v23  ;;  %v102_v41 = vld [vmem:[#allocation2 + $0x218] sm:$0xff]  ;;  %v96_v23 = vld [vmem:[#allocation2 + $0x1e8] sm:$0xff] }
 0x44c   :  { %675 = vmin.xlane.f32.xlu1 %v674_v46  ;;  %210 = vmatpush.msra.mxu1 %v36_v14  ;;  %v95_v46 = vld [vmem:[#allocation2 + $0x1e0] sm:$0xff] }
 0x44d   :  { %259 = vmatpush.msrb.mxu3 %v143_v63  ;;  %179 = vmatmul.f32.vlgmr.msra.gmra.mxu0 %v1079_v16  ;;  %v89_v63 = vld [vmem:[#allocation2 + $0x1b0] sm:$0xff]  ;;  %v67_v14 = vld [vmem:[#allocation2 + $0x100] sm:$0xff] }
 0x44e   :  { %211 = vmatmul.f32.vlgmr.msra.gmra.mxu1 %v1079_v16  ;;  %291 = vmatpush.msrb.mxu0 %v144_v2  ;;  %v124_v16 = vld [vmem:[#allocation2 + $0x2c8] sm:$0xff]  ;;  %v45_v2 = vld [vmem:[#allocation2 + $0x50] sm:$0xff] }
 0x44f   :  { %260 = vmatpush.msrb.mxu3 %v136_v1  ;;  %323 = vmatpush.msrb.mxu1 %v145_v25  ;;  %v60_v1 = vld [vmem:[#allocation2 + $0xc8] sm:$0xff]  ;;  %v38_v25 = vld [vmem:[#allocation2 + $0x18] sm:$0xff] }
 0x450   :  { %292 = vmatpush.msrb.mxu0 %v137_v5  ;;  %191 = vmatmul.f32.vlgmr.msra.gmra.mxu3 %v1103_v36  ;;  %v75_v5 = vld [vmem:[#allocation2 + $0x140] sm:$0xff] }
 0x451   :  { %v1285_v60 = vpop.xlane.xlu2 %685  ;;  %261 = vmatpush.msrb.mxu3 %v129_v3  ;;  %v82_v3 = vld [vmem:[#allocation2 + $0x178] sm:$0xff] }
 0x452   :  { %vm687_vm13 = vcmp.eq.f32.partialorder %v1266_v28, %v1285_v60  ;;  %v138_v28 = vld [vmem:[#allocation2 + $0x338] sm:$0xff]  ;;  %293 = vmatpush.msrb.mxu0 %v130_v10  ;;  %v1011_v10 = vld [vmem:[%s1483_s0] sm:$0xff]  ;;  %v692_v49 = vcvt.f32.s32 %v1285_v60 }
 0x453   :  { %v688_v0 = vsel %vm687_vm13, %v683_v62, inf  ;;  %262 = vmatpush.msrb.mxu3 %v122_v8  ;;  %324 = vmatpush.msrb.mxu1 %v138_v28  ;;  %v59_v62 = vld [vmem:[#allocation2 + $0xc0] sm:$0xff]  ;;  %v46_v8 = vld [vmem:[#allocation2 + $0x58] sm:$0xff] }
 0x454   :  { %689 = vmin.xlane.f32.xlu0 %v688_v0  ;;  %294 = vmatpush.msrb.mxu0 %v123_v13  ;;  %v52_v0 = vld [vmem:[#allocation2 + $0x88] sm:$0xff]  ;;  %v39_v28 = vld [vmem:[#allocation2 + $0x20] sm:$0xff]  ;;  %v61_v13 = vld [vmem:[#allocation2 + $0xd0] sm:$0xff] }
 0x455   :  { %263 = vmatpush.msrb.mxu3 %v115_v11  ;;  %325 = vmatpush.msrb.mxu1 %v131_v12  ;;  %v1013_v11 = vld [vmem:[%s1483_s0 + $0x10] sm:$0xff]  ;;  %v68_v12 = vld [vmem:[#allocation2 + $0x108] sm:$0xff] }
 0x456   :  { %182 = vmatmul.f32.gmra.mxu0 %v1085_v21  ;;  %214 = vmatmul.f32.gmra.mxu1 %v1085_v21  ;;  %v81_v21 = vld [vmem:[#allocation2 + $0x170] sm:$0xff] }
 0x457   :  { %264 = vmatpush.msrb.mxu3 %v108_v20  ;;  %295 = vmatpush.msrb.mxu0 %v116_v27  ;;  %v54_v20 = vld [vmem:[#allocation2 + $0x98] sm:$0xff]  ;;  %v47_v27 = vld [vmem:[#allocation2 + $0x60] sm:$0xff] }
 0x458   :  { %326 = vmatpush.msrb.mxu1 %v124_v16  ;;  %v1046_v16 = vmov 1  }
 0x459   :  { %265 = vmatpush.msrb.mxu3 %v101_v29  ;;  %296 = vmatpush.msrb.mxu0 %v109_v33  ;;  %v40_v29 = vld [vmem:[#allocation2 + $0x28] sm:$0xff]  ;;  %v1047_v33 = vmov 0  }
 0x45a   :  { %327 = vmatpush.msrb.mxu1 %v117_v35  ;;  %962 = vset.pattern.permute.xlu2 %v1046_v16  ;;  %v636_v35 = vcvt.f32.s32 %v1269_v32 }
 0x45b   :  { %266 = vmatpush.msrb.mxu3 %v94_v15  ;;  %297 = vmatpush.msrb.mxu0 %v102_v41  ;;  %v1015_v15 = vld [vmem:[%s1483_s0 + $0x20] sm:$0xff] }
 0x45c   :  { %328 = vmatpush.msrb.mxu1 %v110_v18  ;;  %961 = vset.pattern.permute.xlu1 %v1047_v33 }
 0x45d   :  { %267 = vmatpush.msrb.mxu3 %v87_v45  ;;  %298 = vmatpush.msrb.mxu0 %v95_v46  ;;  %v637_v45 = vshll.u32 %v636_v35, 16 }
 0x45e   :  { %185 = vmatmul.f32.gmra.mxu0 %v1091_v26  ;;  %217 = vmatmul.f32.gmra.mxu1 %v1091_v26  ;;  %v53_v26 = vld [vmem:[#allocation2 + $0x90] sm:$0xff] }
 0x45f   :  { %268 = vmatpush.msrb.mxu3 %v80_v51  ;;  %299 = vmatpush.msrb.mxu0 %v88_v52  ;;  %v1048_v51 = vmov 0.0  }
 0x460   :  { %329 = vmatpush.msrb.mxu1 %v103_v55  ;;  %973 = vset.pattern.permute.xlu0 %v1047_v33  ;;  %v925_v52 = vsel %vm595_vm15, 1.0, %v1048_v51  ;;  %v926_v30 = vsel %vm596_vm0, 1.0, %v1048_v51  ;;  %v927_v22 = vsel %vm597_vm1, 1.0, %v1048_v51 }
 0x461   :  { %269 = vmatpush.msrb.mxu3 %v73_v53  ;;  %300 = vmatpush.msrb.mxu0 %v81_v21  ;;  %v650_v53 = vcvt.f32.s32 %v1272_v56  ;;  %v705_v21 = vmul.f32 %v925_v52, %v1169_v19  ;;  %v664_v56 = vcvt.f32.s32 %v1275_v6 }
 0x462   :  { %330 = vmatpush.msrb.mxu1 %v96_v23 }
 0x463   :  { %270 = vmatpush.msrb.mxu3 %v66_v57  ;;  %301 = vmatpush.msrb.mxu0 %v74_v59  ;;  %v651_v23 = vshll.u32 %v650_v53, 16 }
 0x464   :  { %331 = vmatpush.msrb.mxu1 %v89_v63 }
 0x465   :  { %271 = vmatpush.msrb.mxu3 %v59_v62  ;;  %302 = vmatpush.msrb.mxu0 %v67_v14 }
 0x466   :  { %188 = vmatmul.f32.gmra.mxu0 %v1097_v31  ;;  %220 = vmatmul.f32.gmra.mxu1 %v1097_v31  ;;  %v1012_v31 = vld [vmem:[%s1483_s0 + $0x8] sm:$0xff] }
 0x467   :  { %272 = vmatpush.msrb.mxu3 %v52_v0  ;;  %303 = vmatpush.msrb.mxu0 %v60_v1  ;;  %v665_v1 = vshll.u32 %v664_v56, 16 }
 0x468   :  { %332 = vmatpush.msrb.mxu1 %v82_v3 }
 0x469   :  { %273 = vmatpush.msrb.mxu3 %v45_v2  ;;  %304 = vmatpush.msrb.mxu0 %v53_v26 }
 0x46a   :  { %333 = vmatpush.msrb.mxu1 %v75_v5 }
 0x46b   :  { %274 = vmatpush.msrb.mxu3 %v38_v25  ;;  %305 = vmatpush.msrb.mxu0 %v46_v8  ;;  %v1049_v25 = vmov 2   ;;  %v1050_v8 = vmov 3  }
 0x46c   :  { %275 = vmatmul.f32.vlgmr.msrb.gmra.mxu3 %v1011_v10  ;;  %334 = vmatpush.msrb.mxu1 %v68_v12 }
 0x46d   :  { %306 = vmatpush.msrb.mxu0 %v39_v28 }
 0x46e   :  { %307 = vmatmul.f32.vlgmr.msrb.gmra.mxu0 %v1011_v10  ;;  %223 = vmatmul.f32.gmra.mxu1 %v1103_v36  ;;  %v1014_v36 = vld [vmem:[%s1483_s0 + $0x18] sm:$0xff] }
 0x46f   :  { %335 = vmatpush.msrb.mxu1 %v61_v13 }
 0x471   :  { %336 = vmatpush.msrb.mxu1 %v54_v20 }
 0x473   :  { %337 = vmatpush.msrb.mxu1 %v47_v27 }
 0x474   :  { %278 = vmatmul.f32.gmra.mxu3 %v1012_v31 }
 0x475   :  { %338 = vmatpush.msrb.mxu1 %v40_v29  ;;  %v1052_v29 = vmov 5  }
 0x476   :  { %310 = vmatmul.f32.gmra.mxu0 %v1012_v31  ;;  %339 = vmatmul.f32.vlgmr.msrb.gmra.mxu1 %v1011_v10  ;;  %v693_v10 = vshll.u32 %v692_v49, 16 }
 0x47c   :  { %281 = vmatmul.f32.gmra.mxu3 %v1013_v11 }
 0x47e   :  { %313 = vmatmul.f32.gmra.mxu0 %v1013_v11  ;;  %342 = vmatmul.f32.gmra.mxu1 %v1012_v31 }
 0x484   :  { %284 = vmatmul.f32.gmra.mxu3 %v1014_v36 }
 0x486   :  { %316 = vmatmul.f32.gmra.mxu0 %v1014_v36  ;;  %345 = vmatmul.f32.gmra.mxu1 %v1013_v11 }
 0x48c   :  { %287 = vmatmul.f32.gmra.mxu3 %v1015_v15 }
 0x48e   :  { %319 = vmatmul.f32.gmra.mxu0 %v1015_v15  ;;  %348 = vmatmul.f32.gmra.mxu1 %v1014_v36 }
 0x496   :  { %351 = vmatmul.f32.gmra.mxu1 %v1015_v15  ;;  %v679_v15 = vshll.u32 %v678_v9, 16 }
 0x4a7   :  { %v634_v41 = vpop.xlane.xlu1 %633 }
 0x4a8   :  { %v635_v18 = vcvt.f32.s32 %v634_v41 }
 0x4aa   :  { %v638_v46 = vadd.s32 %v637_v45, %v635_v18 }
 0x4ac   :  { %vm710_vm14 = vcmp.eq.s32.totalorder %v1129_v48, %v638_v46 }
 0x4ad   :  { %v930_v55 = vsel %vm710_vm14, 1.0, %v1048_v51 }
 0x4ae   :  { %v725_v32 = vmul.f32 %v930_v55, %v1234_v4  ;;  %v706_v4 = vmul.f32 %v926_v30, %v1174_v43 }
 0x4af   :  { %v648_v57 = vpop.xlane.xlu0 %647 }
 0x4b0   :  { %v730_v59 = vadd.f32 %v725_v32, %v705_v21  ;;  %v649_v62 = vcvt.f32.s32 %v648_v57 }
 0x4b2   :  { %v652_v63 = vadd.s32 %v651_v23, %v649_v62  ;;  %766 = vperm.xlu2 %962, %v730_v59   ;;  %737 = vperm.xlu1 %961, %v730_v59  }
 0x4b4   :  { %vm711_vm15 = vcmp.eq.s32.totalorder %v1129_v48, %v652_v63 }
 0x4b5   :  { %v931_v19 = vsel %vm711_vm15, 1.0, %v1048_v51 }
 0x4b6   :  { %v726_v14 = vmul.f32 %v931_v19, %v1238_v7  ;;  %v707_v7 = vmul.f32 %v927_v22, %v1179_v50  ;;  %v929_v50 = vsel %vm599_vm3, 1.0, %v1048_v51 }
 0x4b7   :  { %v662_v0 = vpop.xlane.xlu2 %661  ;;  %v709_v12 = vmul.f32 %v929_v50, %v1189_v58 }
 0x4b8   :  { %v731_v2 = vadd.f32 %v726_v14, %v706_v4  ;;  %v663_v3 = vcvt.f32.s32 %v662_v0 }
 0x4ba   :  { %v666_v26 = vadd.s32 %v665_v1, %v663_v3  ;;  %963 = vset.pattern.permute.xlu2 %v1049_v25  ;;  %968 = vset.pattern.permute.xlu1 %v1046_v16  ;;  %v245_v3 = vadd.f32 %v1111_v37, %v1118_v40 }
 0x4bb   :  { %796 = vperm.xlu2 %963, %v730_v59   ;;  %770 = vperm.xlu1 %968, %v731_v2  }
 0x4bc   :  { %vm712_vm0 = vcmp.eq.s32.totalorder %v1129_v48, %v666_v26 }
 0x4bd   :  { %v932_v43 = vsel %vm712_vm0, 1.0, %v1048_v51 }
 0x4be   :  { %v727_v6 = vmul.f32 %v932_v43, %v1242_v34  ;;  %v1051_v34 = vmov 4  }
 0x4bf   :  { %v676_v20 = vpop.xlane.xlu1 %675 }
 0x4c0   :  { %v1346_v5 = vadd.f32 %v727_v6, %v707_v7  ;;  %v677_v27 = vcvt.f32.s32 %v676_v20 }
 0x4c2   :  { %747 = vperm.xlu0 %973, %v1346_v5   ;;  %v680_v35 = vadd.s32 %v679_v15, %v677_v27 }
 0x4c3   :  { %964 = vset.pattern.permute.xlu2 %v1050_v8  ;;  %969 = vset.pattern.permute.xlu1 %v1049_v25 }
 0x4c4   :  { %826 = vperm.xlu2 %964, %v730_v59   ;;  %800 = vperm.xlu1 %969, %v731_v2   ;;  %vm713_vm3 = vcmp.eq.s32.totalorder %v1129_v48, %v680_v35 }
 0x4c5   :  { %v933_v58 = vsel %vm713_vm3, 1.0, %v1048_v51 }
 0x4c6   :  { %v728_v39 = vmul.f32 %v933_v58, %v1249_v17 }
 0x4c7   :  { %v690_v28 = vpop.xlane.xlu0 %689 }
 0x4c8   :  { %v691_v31 = vcvt.f32.s32 %v690_v28 }
 0x4ca   :  { %v694_v11 = vadd.s32 %v693_v10, %v691_v31  ;;  %984 = vset.pattern.permute.xlu0 %v1046_v16  ;;  %v180_v41 = vpop.f32.mrf.mxu0 }
 0x4cb   :  { %v212_v45 = vpop.f32.mrf.mxu1 }
 0x4cc   :  { %vm714_vm1 = vcmp.eq.s32.totalorder %v1129_v48, %v694_v11  ;;  %965 = vset.pattern.permute.xlu2 %v1051_v34  ;;  %970 = vset.pattern.permute.xlu1 %v1050_v8  ;;  %v1016_v48 = vld [vmem:[%s1485_s2] sm:$0xff] }
 0x4cd   :  { %v934_v60 = vsel %vm714_vm1, 1.0, %v1048_v51  ;;  %856 = vperm.xlu2 %965, %v730_v59   ;;  %830 = vperm.xlu1 %970, %v731_v2   ;;  %v1391_v61 = vperm.slane %v1016_v48, 0  ;;  %v1404_v52 = vperm.slane %v1016_v48, 1  ;;  %v1432_v1 = vperm.slane %v1016_v48, 3 }
 0x4ce   :  { %v729_v13 = vmul.f32 %v934_v60, %v1259_v24  ;;  %v928_v24 = vsel %vm598_vm2, 1.0, %v1048_v51  ;;  %v1437_v6 = vperm.slane %v1016_v48, 4  ;;  %v1439_v28 = vperm.slane %v1016_v48, 5 }
 0x4cf   :  { %v708_v18 = vmul.f32 %v928_v24, %v1184_v54  ;;  %v181_v14 = vadd.f32 %v180_v41, %v1391_v61  ;;  %v213_v0 = vadd.f32 %v212_v45, %v1404_v52 }
 0x4d0   :  { %v1363_v36 = vadd.f32 %v729_v13, %v709_v12 }
 0x4d1   :  { %v733_v46 = vadd.f32 %v728_v39, %v708_v18 }
 0x4d2   :  { %782 = vperm.xlu0 %984, %v1363_v36  }
 0x4d3   :  { %v1393_v54 = vpop.f32.mrf.mxu0  ;;  %v1395_v17 = vpop.f32.mrf.mxu1 }
 0x4d4   :  { %v192_v51 = vpop.f32.mrf.mxu3  ;;  %v184_v35 = vadd.f32 %v1393_v54, %v1391_v61  ;;  %v216_v41 = vadd.f32 %v1395_v17, %v1404_v52 }
 0x4d5   :  { %966 = vset.pattern.permute.xlu2 %v1052_v29  ;;  %971 = vset.pattern.permute.xlu1 %v1051_v34 }
 0x4d6   :  { %886 = vperm.xlu2 %966, %v730_v59   ;;  %860 = vperm.xlu1 %971, %v731_v2  }
 0x4da   :  { %985 = vset.pattern.permute.xlu0 %v1049_v25 }
 0x4db   :  { %812 = vperm.xlu0 %985, %v1363_v36   ;;  %v186_v53 = vpop.f32.mrf.mxu0  ;;  %v218_v55 = vpop.f32.mrf.mxu1 }
 0x4dc   :  { %v187_v21 = vadd.f32 %v186_v53, %v1391_v61  ;;  %v219_v32 = vadd.f32 %v218_v55, %v1404_v52 }
 0x4de   :  { %967 = vset.pattern.permute.xlu2 %v1047_v33  ;;  %972 = vset.pattern.permute.xlu1 %v1052_v29 }
 0x4df   :  { %890 = vperm.xlu1 %972, %v731_v2   ;;  %742 = vperm.xlu2 %967, %v731_v2  }
 0x4e3   :  { %986 = vset.pattern.permute.xlu0 %v1050_v8  ;;  %v189_v57 = vpop.f32.mrf.mxu0  ;;  %v221_v59 = vpop.f32.mrf.mxu1 }
 0x4e4   :  { %842 = vperm.xlu0 %986, %v1363_v36   ;;  %v1413_v23 = vadd.f32 %v189_v57, %v1391_v61  ;;  %v1416_v62 = vadd.f32 %v221_v59, %v1404_v52  ;;  %v248_v57 = vadd.f32 %v1113_v38, %v1118_v40 }
 0x4e7   :  { %979 = vset.pattern.permute.xlu1 %v1046_v16  ;;  %974 = vset.pattern.permute.xlu2 %v1046_v16  ;;  %v1398_v16 = vadd.f32 %v192_v51, %v1391_v61 }
 0x4e8   :  { %778 = vperm.xlu1 %979, %v733_v46   ;;  %774 = vperm.xlu2 %974, %v1346_v5  }
 0x4eb   :  { %v224_v63 = vpop.f32.mrf.mxu1 }
 0x4ec   :  { %987 = vset.pattern.permute.xlu0 %v1051_v34  ;;  %v1422_v30 = vadd.f32 %v224_v63, %v1404_v52 }
 0x4ed   :  { %872 = vperm.xlu0 %987, %v1363_v36  }
 0x4f0   :  { %980 = vset.pattern.permute.xlu1 %v1049_v25  ;;  %975 = vset.pattern.permute.xlu2 %v1049_v25 }
 0x4f1   :  { %808 = vperm.xlu1 %980, %v733_v46   ;;  %804 = vperm.xlu2 %975, %v1346_v5  }
 0x4f3   :  { %v340_v10 = vpop.f32.mrf.mxu1 }
 0x4f4   :  { %v341_v37 = vadd.f32 %v340_v10, %v1439_v28 }
 0x4f5   :  { %990 = vset.pattern.permute.xlu0 %v1052_v29 }
 0x4f6   :  { %902 = vperm.xlu0 %990, %v1363_v36  }
 0x4f9   :  { %981 = vset.pattern.permute.xlu1 %v1050_v8  ;;  %976 = vset.pattern.permute.xlu2 %v1050_v8  ;;  %v308_v8 = vpop.f32.mrf.mxu0 }
 0x4fa   :  { %838 = vperm.xlu1 %981, %v733_v46   ;;  %834 = vperm.xlu2 %976, %v1346_v5   ;;  %v309_v11 = vadd.f32 %v308_v8, %v1437_v6 }
 0x501   :  { %v311_v48 = vpop.f32.mrf.mxu0 }
 0x502   :  { %982 = vset.pattern.permute.xlu1 %v1051_v34  ;;  %977 = vset.pattern.permute.xlu2 %v1051_v34  ;;  %v312_v61 = vadd.f32 %v311_v48, %v1437_v6 }
 0x503   :  { %868 = vperm.xlu1 %982, %v733_v46   ;;  %864 = vperm.xlu2 %977, %v1346_v5  }
 0x50b   :  { %983 = vset.pattern.permute.xlu1 %v1047_v33  ;;  %978 = vset.pattern.permute.xlu2 %v1047_v33  ;;  %v276_v33 = vpop.f32.mrf.mxu3 }
 0x50c   :  { %v767_v56 = vpop.permute.xlu2 %766  ;;  %752 = vperm.xlu2 %978, %v733_v46   ;;  %757 = vperm.xlu1 %983, %v1363_v36   ;;  %v277_v43 = vadd.f32 %v276_v33, %v1432_v1 }
 0x50d   :  { %v785_v26 = vmul.f32 %v767_v56, %v213_v0 }
 0x513   :  { %v279_v45 = vpop.f32.mrf.mxu3 }
 0x514   :  { %988 = vset.pattern.permute.xlu2 %v1052_v29  ;;  %989 = vset.pattern.permute.xlu1 %v1052_v29  ;;  %v280_v53 = vadd.f32 %v279_v45, %v1432_v1 }
 0x515   :  { %v797_v19 = vpop.permute.xlu2 %796  ;;  %894 = vperm.xlu2 %988, %v1346_v5   ;;  %898 = vperm.xlu1 %989, %v733_v46  }
 0x516   :  { %v815_v22 = vmul.f32 %v797_v19, %v245_v3 }
 0x51b   :  { %v282_v0 = vpop.f32.mrf.mxu3 }
 0x51c   :  { %v283_v33 = vadd.f32 %v282_v0, %v1432_v1 }
 0x51e   :  { %v827_v4 = vpop.permute.xlu2 %826 }
 0x51f   :  { %v845_v31 = vmul.f32 %v827_v4, %v277_v43 }
 0x524   :  { %v738_v2 = vpop.permute.xlu1 %737 }
 0x525   :  { %v760_v25 = vmul.f32 %v738_v2, %v181_v14 }
 0x527   :  { %v790_v7 = vadd.f32 %v785_v26, %v760_v25  ;;  %v857_v5 = vpop.permute.xlu2 %856 }
 0x528   :  { %v875_v60 = vmul.f32 %v857_v5, %v309_v11 }
 0x529   :  { %v820_v49 = vadd.f32 %v815_v22, %v790_v7  ;;  %v314_v22 = vpop.f32.mrf.mxu0 }
 0x52a   :  { %v315_v43 = vadd.f32 %v314_v22, %v1437_v6 }
 0x52b   :  { %v850_v50 = vadd.f32 %v845_v31, %v820_v49 }
 0x52d   :  { %v771_v34 = vpop.permute.xlu1 %770  ;;  %v880_v13 = vadd.f32 %v875_v60, %v850_v50  ;;  %v285_v60 = vpop.f32.mrf.mxu3 }
 0x52e   :  { %v786_v51 = vmul.f32 %v771_v34, %v216_v41 }
 0x530   :  { %v887_v12 = vpop.permute.xlu2 %886 }
 0x531   :  { %v905_v36 = vmul.f32 %v887_v12, %v341_v37  ;;  %v286_v12 = vadd.f32 %v285_v60, %v1432_v1  ;;  %v317_v41 = vpop.f32.mrf.mxu0 }
 0x533   :  { %v910_v20 = vadd.f32 %v905_v36, %v880_v13 }
 0x534   :  { %v748_v15 = vpop.permute.xlu0 %747 }
 0x535   :  { %915 = vst [vmem:[%s1486_s3] sm:$0xff] %v910_v20  ;;  %v762_v24 = vmul.f32 %v748_v15, %v187_v21  ;;  %v343_v21 = vpop.f32.mrf.mxu1 }
 0x536   :  { %v801_v9 = vpop.permute.xlu1 %800  ;;  %v344_v4 = vadd.f32 %v343_v21, %v1439_v28 }
 0x539   :  { %v743_v27 = vpop.permute.xlu2 %742 }
 0x53a   :  { %v761_v46 = vmul.f32 %v743_v27, %v184_v35 }
 0x53c   :  { %v791_v59 = vadd.f32 %v786_v51, %v761_v46  ;;  %v288_v51 = vpop.f32.mrf.mxu3 }
 0x53d   :  { %v346_v20 = vpop.f32.mrf.mxu1 }
 0x53e   :  { %v347_v27 = vadd.f32 %v346_v20, %v1439_v28 }
 0x53f   :  { %v831_v29 = vpop.permute.xlu1 %830 }
 0x540   :  { %v846_v63 = vmul.f32 %v831_v29, %v280_v53  ;;  %v320_v53 = vpop.f32.mrf.mxu0 }
 0x542   :  { %v775_v58 = vpop.permute.xlu2 %774 }
 0x543   :  { %v787_v39 = vmul.f32 %v775_v58, %v219_v32  ;;  %v816_v32 = vmul.f32 %v801_v9, %v248_v57 }
 0x544   :  { %v783_v5 = vpop.permute.xlu0 %782 }
 0x545   :  { %v792_v18 = vadd.f32 %v787_v39, %v762_v24  ;;  %v821_v52 = vadd.f32 %v816_v32, %v791_v59  ;;  %v349_v45 = vpop.f32.mrf.mxu1  ;;  %v789_v57 = vmul.f32 %v783_v5, %v1422_v30  ;;  %v289_v59 = vadd.f32 %v288_v51, %v1432_v1 }
 0x546   :  { %v321_v32 = vadd.f32 %v320_v53, %v1437_v6  ;;  %v350_v0 = vadd.f32 %v349_v45, %v1439_v28 }
 0x547   :  { %v851_v14 = vadd.f32 %v846_v63, %v821_v52 }
 0x548   :  { %v861_v55 = vpop.permute.xlu1 %860 }
 0x549   :  { %v876_v56 = vmul.f32 %v861_v55, %v312_v61 }
 0x54b   :  { %v805_v54 = vpop.permute.xlu2 %804  ;;  %v881_v38 = vadd.f32 %v876_v56, %v851_v14 }
 0x54c   :  { %v817_v17 = vmul.f32 %v805_v54, %v1121_v42 }
 0x54d   :  { %v813_v11 = vpop.permute.xlu0 %812  ;;  %v352_v54 = vpop.f32.mrf.mxu1 }
 0x54e   :  { %v822_v19 = vadd.f32 %v817_v17, %v792_v18  ;;  %v819_v21 = vmul.f32 %v813_v11, %v1127_v47  ;;  %v353_v52 = vadd.f32 %v352_v54, %v1439_v28 }
 0x551   :  { %v891_v2 = vpop.permute.xlu1 %890 }
 0x552   :  { %v906_v40 = vmul.f32 %v891_v2, %v344_v4 }
 0x554   :  { %v911_v3 = vadd.f32 %v906_v40, %v881_v38  ;;  %v835_v26 = vpop.permute.xlu2 %834 }
 0x555   :  { %v847_v25 = vmul.f32 %v835_v26, %v283_v33 }
 0x556   :  { %916 = vst [vmem:[%s1486_s3 + $0x8] sm:$0xff] %v911_v3  ;;  %v843_v24 = vpop.permute.xlu0 %842 }
 0x557   :  { %v852_v42 = vadd.f32 %v847_v25, %v822_v19  ;;  %v849_v17 = vmul.f32 %v843_v24, %v289_v59 }
 0x55a   :  { %v779_v7 = vpop.permute.xlu1 %778 }
 0x55b   :  { %v788_v34 = vmul.f32 %v779_v7, %v1416_v62  ;;  %v318_v62 = vadd.f32 %v317_v41, %v1437_v6 }
 0x55d   :  { %v865_v8 = vpop.permute.xlu2 %864 }
 0x55e   :  { %v877_v49 = vmul.f32 %v865_v8, %v315_v43 }
 0x55f   :  { %v873_v48 = vpop.permute.xlu0 %872 }
 0x560   :  { %v882_v10 = vadd.f32 %v877_v49, %v852_v42  ;;  %v879_v4 = vmul.f32 %v873_v48, %v321_v32 }
 0x563   :  { %v809_v31 = vpop.permute.xlu1 %808 }
 0x564   :  { %v818_v13 = vmul.f32 %v809_v31, %v1124_v44 }
 0x566   :  { %v753_v50 = vpop.permute.xlu2 %752 }
 0x567   :  { %v763_v37 = vmul.f32 %v753_v50, %v1413_v23 }
 0x568   :  { %v903_v19 = vpop.permute.xlu0 %902 }
 0x569   :  { %v793_v36 = vadd.f32 %v788_v34, %v763_v37  ;;  %v909_v30 = vmul.f32 %v903_v19, %v353_v52 }
 0x56b   :  { %v823_v9 = vadd.f32 %v818_v13, %v793_v36 }
 0x56c   :  { %v839_v29 = vpop.permute.xlu1 %838 }
 0x56d   :  { %v848_v15 = vmul.f32 %v839_v29, %v286_v12 }
 0x56f   :  { %v853_v35 = vadd.f32 %v848_v15, %v823_v9  ;;  %v895_v58 = vpop.permute.xlu2 %894 }
 0x570   :  { %v907_v39 = vmul.f32 %v895_v58, %v347_v27 }
 0x572   :  { %v912_v23 = vadd.f32 %v907_v39, %v882_v10 }
 0x574   :  { %917 = vst [vmem:[%s1486_s3 + $0x10] sm:$0xff] %v912_v23 }
 0x575   :  { %v869_v44 = vpop.permute.xlu1 %868 }
 0x576   :  { %v878_v18 = vmul.f32 %v869_v44, %v318_v62 }
 0x578   :  { %v883_v46 = vadd.f32 %v878_v18, %v853_v35 }
 0x57e   :  { %v758_v55 = vpop.permute.xlu1 %757 }
 0x57f   :  { %v764_v61 = vmul.f32 %v758_v55, %v1398_v16 }
 0x581   :  { %v794_v63 = vadd.f32 %v789_v57, %v764_v61 }
 0x583   :  { %v824_v56 = vadd.f32 %v819_v21, %v794_v63 }
 0x585   :  { %v854_v14 = vadd.f32 %v849_v17, %v824_v56 }
 0x587   :  { %v884_v33 = vadd.f32 %v879_v4, %v854_v14  ;;  %v899_v1 = vpop.permute.xlu1 %898 }
 0x588   :  { %v908_v2 = vmul.f32 %v899_v1, %v350_v0 }
 0x589   :  { %v914_v16 = vadd.f32 %v909_v30, %v884_v33 }
 0x58a   :  { %v913_v38 = vadd.f32 %v908_v2, %v883_v46 }
 0x58b   :  { %919 = vst [vmem:[%s1486_s3 + $0x20] sm:$0xff] %v914_v16 }
 0x58c   :  { %918 = vst [vmem:[%s1486_s3 + $0x18] sm:$0xff] %v913_v38 }
 0x58d   :  { %924 = vsyncpa [#allocation3], 1 }

</bundles_post_ra>
